<compile_context>
chip_gen: v7x
topology: tpu7x:2x2x1
jax: 0.10.0
libtpu: 0.0.40
codegen_flags: <defaults>
</compile_context>

<pallas_src>
import jax
import jax.numpy as jnp
from jax.experimental import pallas as pl
from jax.experimental.pallas import tpu as pltpu

_MIB = 1024 * 1024


# --------------------------------------------------------------------------
# Kernels
# --------------------------------------------------------------------------
def _project_kernel(x_ref, w_ref, xw_ref):
    """xw = x_tile @ W   (f32 accumulate, stored bf16 for the MXU aggregation)."""
    xw_ref[...] = jnp.dot(
        x_ref[...], w_ref[...], preferred_element_type=jnp.float32
    ).astype(xw_ref.dtype)


def _agg_bias_relu_kernel(adj_ref, xw_ref, b_ref, h_ref):
    """h = relu(A_hat_tile @ XW + b)  (bf16 x bf16 -> f32 MXU, stored bf16)."""
    agg = jnp.dot(adj_ref[...], xw_ref[...], preferred_element_type=jnp.float32)
    h_ref[...] = jnp.maximum(agg + b_ref[...], 0.0).astype(h_ref.dtype)


def _agg_heads_kernel(adj_ref, h_ref, w_ref, b_ref, out_ref):
    """out = (A_hat_tile @ H) @ [Wmu|Wlv] + [bmu|blv]  (shared aggregation)."""
    agg = jnp.dot(adj_ref[...], h_ref[...], preferred_element_type=jnp.float32)
    out_ref[...] = (
        jnp.dot(agg, w_ref[...], preferred_element_type=jnp.float32) + b_ref[...]
    ).astype(out_ref.dtype)


# --------------------------------------------------------------------------
# Tiling / compiler-parameter helpers
# --------------------------------------------------------------------------
def _pick_row_tile(n):
    """Largest row tile (multiple of 16 for bf16 sublane packing) keeping the
    bf16 adjacency tile, double-buffered, comfortably inside v7x's 64 MiB."""
    if n <= 16 or n % 16 != 0:
        return n                          # full block is the only safe choice
    budget = 8 * _MIB                     # per-buffer budget for the adj tile
    t = (budget // (2 * n)) // 16 * 16
    return int(max(16, min(t, 512, n)))


def _vmem_limit(*nbytes):
    """Scoped-VMEM limit: >= the always-safe 32 MiB default, <= 56 MiB so the
    request also fits v7x's 64 MiB physical VMEM."""
    need = int(2.5 * sum(nbytes))         # double buffering + slack
    return int(min(max(need, 32 * _MIB), 56 * _MIB))


def _params(*vmem_bytes):
    return pltpu.CompilerParams(
        dimension_semantics=("parallel",),
        vmem_limit_bytes=_vmem_limit(*vmem_bytes),
    )


# --------------------------------------------------------------------------
# Layer wrappers (pallas_call)
# --------------------------------------------------------------------------
def _project(x, w, *, tile_n):
    """XW = X @ W, row-tiled, bf16 output."""
    n, fin = x.shape
    h = w.shape[1]
    return pl.pallas_call(
        _project_kernel,
        out_shape=jax.ShapeDtypeStruct((n, h), jnp.bfloat16),
        grid=(pl.cdiv(n, tile_n),),
        in_specs=[
            pl.BlockSpec((tile_n, fin), lambda i: (i, 0)),   # X row tile
            pl.BlockSpec((fin, h), lambda i: (0, 0)),        # W (resident)
        ],
        out_specs=pl.BlockSpec((tile_n, h), lambda i: (i, 0)),
        compiler_params=_params(4 * tile_n * fin, 4 * fin * h, 2 * tile_n * h),
        cost_estimate=pl.CostEstimate(
            flops=2 * n * fin * h,
            transcendentals=0,
            bytes_accessed=4 * n * fin + 4 * fin * h + 2 * n * h),
    )(x, w)


def _aggregate_relu(adj_bf16, xw_bf16, b, *, tile_n):
    """H = relu(A_hat @ XW + b), row-tiled, bf16 output."""
    n = adj_bf16.shape[0]
    h = xw_bf16.shape[1]
    return pl.pallas_call(
        _agg_bias_relu_kernel,
        out_shape=jax.ShapeDtypeStruct((n, h), jnp.bfloat16),
        grid=(pl.cdiv(n, tile_n),),
        in_specs=[
            pl.BlockSpec((tile_n, n), lambda i: (i, 0)),     # A_hat row tile
            pl.BlockSpec((n, h), lambda i: (0, 0)),          # XW (all sources)
            pl.BlockSpec((1, h), lambda i: (0, 0)),          # b1
        ],
        out_specs=pl.BlockSpec((tile_n, h), lambda i: (i, 0)),
        compiler_params=_params(2 * tile_n * n, 2 * n * h, 4 * h, 2 * tile_n * h),
        cost_estimate=pl.CostEstimate(
            flops=2 * n * n * h,
            transcendentals=0,
            bytes_accessed=2 * n * n + 2 * n * h + 4 * h + 2 * n * h),
    )(adj_bf16, xw_bf16, b.reshape(1, h))


def _aggregate_heads(adj_bf16, h_bf16, w_heads, b_heads, *, tile_n):
    """OUT = (A_hat @ H) @ [Wmu|Wlv] + [bmu|blv], row-tiled, f32 output [N, 2C]."""
    n = adj_bf16.shape[0]
    hd = h_bf16.shape[1]
    c2 = w_heads.shape[1]
    return pl.pallas_call(
        _agg_heads_kernel,
        out_shape=jax.ShapeDtypeStruct((n, c2), jnp.float32),
        grid=(pl.cdiv(n, tile_n),),
        in_specs=[
            pl.BlockSpec((tile_n, n), lambda i: (i, 0)),     # A_hat row tile
            pl.BlockSpec((n, hd), lambda i: (0, 0)),         # H (all sources)
            pl.BlockSpec((hd, c2), lambda i: (0, 0)),        # [Wmu | Wlv]
            pl.BlockSpec((1, c2), lambda i: (0, 0)),         # [bmu | blv]
        ],
        out_specs=pl.BlockSpec((tile_n, c2), lambda i: (i, 0)),
        compiler_params=_params(2 * tile_n * n, 2 * n * hd,
                                4 * hd * c2, 4 * c2, 4 * tile_n * c2),
        cost_estimate=pl.CostEstimate(
            flops=2 * n * n * hd + 2 * n * hd * c2,
            transcendentals=0,
            bytes_accessed=2 * n * n + 2 * n * hd + 4 * hd * c2 + 4 * n * c2),
    )(adj_bf16, h_bf16, w_heads, b_heads.reshape(1, c2))


def vgae_encoder_forward(x, adj_norm_bf16, params, *, tile_n=None):
    """VGAEncoder.forward: x = relu(conv1(x)); return (conv_mu(x), conv_logvar(x))."""
    n = x.shape[0]
    t = tile_n if tile_n is not None else _pick_row_tile(n)
    c = params["w_mu"].shape[1]

    xw = _project(x, params["w1"], tile_n=t)                         # [N, 2C] bf16
    h = _aggregate_relu(adj_norm_bf16, xw, params["b1"], tile_n=t)   # [N, 2C] bf16

    w_heads = jnp.concatenate([params["w_mu"], params["w_logvar"]], axis=1)
    b_heads = jnp.concatenate([params["b_mu"], params["b_logvar"]], axis=0)
    out = _aggregate_heads(adj_norm_bf16, h, w_heads, b_heads, tile_n=t)

    return out[:, :c], out[:, c:]


# --------------------------------------------------------------------------
# Glue: sparse edge_index -> dense GCN-normalized adjacency, params
# --------------------------------------------------------------------------
def build_norm_adj(edge_index, num_nodes):
    """Dense D^{-1/2}(A+I)D^{-1/2} with adj[dst, src]=1 per edge (+ self loops)."""
    # TODO(synk): the data-dependent edge scatter stays in host-side JAX; only
    # the dense normalized adjacency is consumed by the Pallas kernels.
    src, dst = edge_index[0], edge_index[1]
    a = jnp.zeros((num_nodes, num_nodes), jnp.float32)
    a = a.at[dst, src].set(1.0)
    idx = jnp.arange(num_nodes)
    a = a.at[idx, idx].set(1.0)                       # add self loops
    deg = jnp.sum(a, axis=1)                          # degree incl. self loop
    dinv = jnp.where(deg > 0, 1.0 / jnp.sqrt(deg), 0.0)
    return dinv[:, None] * a * dinv[None, :]


def init_params(key, in_channels, out_channels):
    hd = 2 * out_channels
    k1, k2, k3 = jax.random.split(key, 3)

    def glorot(k, fan_in, fan_out):
        s = jnp.sqrt(6.0 / (fan_in + fan_out))
        return jax.random.uniform(k, (fan_in, fan_out), jnp.float32, -s, s)

    return {
        "w1": glorot(k1, in_channels, hd),
        "b1": jnp.zeros((hd,), jnp.float32),
        "w_mu": glorot(k2, hd, out_channels),
        "b_mu": jnp.zeros((out_channels,), jnp.float32),
        "w_logvar": glorot(k3, hd, out_channels),
        "b_logvar": jnp.zeros((out_channels,), jnp.float32),
    }


# --------------------------------------------------------------------------
if __name__ == "__main__":
    key = jax.random.PRNGKey(0)
    k_x, k_src, k_dst, k_p = jax.random.split(key, 4)

    N, IN_CH, OUT_CH, E = 32, 16, 8, 64

    x = jax.random.normal(k_x, (N, IN_CH), jnp.float32)
    edge_index = jnp.stack([
        jax.random.randint(k_src, (E,), 0, N),
        jax.random.randint(k_dst, (E,), 0, N),
    ], axis=0)                                         # [2, E]

    adj_norm = build_norm_adj(edge_index, N)
    adj_bf16 = adj_norm.astype(jnp.bfloat16)
    params = init_params(k_p, IN_CH, OUT_CH)

    # tile_n=16 -> grid of 2 row tiles; exercises the tiled + "parallel" path.
    mu, logvar = vgae_encoder_forward(x, adj_bf16, params, tile_n=16)
    mu, logvar = jax.block_until_ready((mu, logvar))

    # Pure-JAX reference mirroring the kernels' mixed-precision dataflow.
    a = adj_bf16.astype(jnp.float32)
    xw = (x @ params["w1"]).astype(jnp.bfloat16).astype(jnp.float32)
    h = jnp.maximum(a @ xw + params["b1"], 0.0)
    h = h.astype(jnp.bfloat16).astype(jnp.float32)
    agg = a @ h
    mu_ref = agg @ params["w_mu"] + params["b_mu"]
    lv_ref = agg @ params["w_logvar"] + params["b_logvar"]

    assert mu.shape == (N, OUT_CH) and logvar.shape == (N, OUT_CH)
    assert bool(jnp.all(jnp.isfinite(mu))) and bool(jnp.all(jnp.isfinite(logvar)))
    assert jnp.allclose(mu, mu_ref, atol=2e-2, rtol=2e-2)
    assert jnp.allclose(logvar, lv_ref, atol=2e-2, rtol=2e-2)
    print("KERNEL_OK")
</pallas_src>

<mosaic_0001>
module attributes {stable_mosaic.version = 11 : i64} {
  func.func @_project_kernel(%arg0: i32, %arg1: memref<16x16xf32, #tpu.memory_space<vmem>>, %arg2: memref<16x16xf32, #tpu.memory_space<vmem>>, %arg3: memref<16x16xbf16, #tpu.memory_space<vmem>>) attributes {dimension_semantics = [#tpu.dimension_semantics<parallel>], iteration_bounds = array<i64: 2>, scalar_prefetch = 0 : i64, scratch_operands = 0 : i64, tpu.core_type = #tpu.core_type<tc>, window_params = [{transform_indices = @transform_0, window_bounds = array<i64: 16, 16>}, {pipeline_mode = #tpu.pipeline_mode<synchronous>, transform_indices = @transform_1, window_bounds = array<i64: 16, 16>}, {transform_indices = @transform_2, window_bounds = array<i64: 16, 16>}]} {
    %c0 = arith.constant 0 : index
    %c0_0 = arith.constant 0 : index
    %0 = vector.load %arg1[%c0, %c0_0] : memref<16x16xf32, #tpu.memory_space<vmem>>, vector<16x16xf32>
    %c0_1 = arith.constant 0 : index
    %c0_2 = arith.constant 0 : index
    %1 = vector.load %arg2[%c0_1, %c0_2] : memref<16x16xf32, #tpu.memory_space<vmem>>, vector<16x16xf32>
    %cst = arith.constant dense<0.000000e+00> : vector<16x16xf32>
    %2 = tpu.matmul %0, %1, %cst {dimension_numbers = #tpu.dot_dimension_numbers<[1], [0], [0], [1], [0, 0, 1, 1], [], []>} : vector<16x16xf32>, vector<16x16xf32>, vector<16x16xf32> -> vector<16x16xf32>
    %3 = arith.truncf %2 : vector<16x16xf32> to vector<16x16xbf16>
    %c0_3 = arith.constant 0 : index
    %c0_4 = arith.constant 0 : index
    %4 = vector.load %arg3[%c0_3, %c0_4] : memref<16x16xbf16, #tpu.memory_space<vmem>>, vector<16x16xbf16>
    tpu.vector_store %arg3[%c0_3, %c0_4], %3 {strides = array<i32>} : memref<16x16xbf16, #tpu.memory_space<vmem>>, vector<16x16xbf16>,
    return
  }
  func.func @transform_0(%arg0: i32) -> (i32, i32) {
    %c0_i32 = arith.constant 0 : i32
    %c0_i32_0 = arith.constant 0 : i32
    return %arg0, %c0_i32 : i32, i32
  }
  func.func @transform_1(%arg0: i32) -> (i32, i32) {
    %c0_i32 = arith.constant 0 : i32
    %c0_i32_0 = arith.constant 0 : i32
    %c0_i32_1 = arith.constant 0 : i32
    return %c0_i32, %c0_i32_0 : i32, i32
  }
  func.func @transform_2(%arg0: i32) -> (i32, i32) {
    %c0_i32 = arith.constant 0 : i32
    %c0_i32_0 = arith.constant 0 : i32
    return %arg0, %c0_i32 : i32, i32
  }
}

</mosaic_0001>

<bundles_post_ra>
// kernel: tpu_custom_call.1
= control target key start
LH: loop header
LB: loop body
LE: loop exit
PB: predicated region body
PF: predicated region fallthrough
CT: control target
= control target key end

     0   :  { %s363_s9 = smov 0   ;;  %s386_s0 = inlined_call_operand.vmem [shape: f32[32,16], index: 0, kind: input, shape index: {}]   ;;  %s387_s1 = inlined_call_operand.vmem [shape: f32[16,16], index: 1, kind: input, shape index: {}]   ;;  %s388_s2 = inlined_call_operand.vmem [shape: bf16[32,16], index: 2, kind: output, shape index: {}]  }
   0x1 LB: > { %s300_s10 = sadd.s32 4294967295, %s346_s9   ;;  %p304_p0 = scmp.ge.s32.totalorder %s346_s9, 1  ;;  %s346_s9 = sphi %s363_s9, %s12_s9  }
   0x2   : > { %p113_p1 = scmp.lt.s32.totalorder %s346_s9, 3 }
   0x4   : > { %p114_p2 = pnand %p304_p0, %p113_p1 }
   0x5   : > { %v149_v0 = vld [vmem:[%s387_s1] sm:$0xff] (!%p114_p2)  ;;  %v150_v1 = vld [vmem:[%s387_s1 + $0x8] sm:$0xff] (!%p114_p2)  ;;  %s305_s15 = sshll.u32 (!%p114_p2), %s300_s10, 1  ;;  %vm151_vm0 = vcmask (!%p114_p2), 130048   ;;  %vm241_vm1 = vcmask (!%p114_p2), 125952  }
   0x6   : > { %117 = sbr.rel (%p114_p2) target bundleno = 234 (0xea), region = 28  ;;  %v328_v2 = vpack.c.bf16 (!%p114_p2), %v150_v1, %v149_v0  ;;  %p136_p3 = scmp.lt.s32.totalorder (!%p114_p2), %s305_s15, 3 }
   0x8   : > { %329 = vmatprep.subr.bf16.mxu0 (!%p114_p2), %v328_v2 }
   0x9   : > { %331 = vmatpush3.bf16.msra.mxu0 (!%p114_p2), %v328_v2 }
   0xd   : > { %s390_s15 = smov (!%p136_p3, %s305_s15), 3 }
   0xe   : > { %s306_s16 = sshll.u32 %s390_s15, 3  ;;  %s308_s20 = sshll.u32 %s390_s15, 2 }
   0xf   : > { %s139_s19 = scalar_lea.vmem %s386_s0, %s306_s16  ;;  %s145_s23 = scalar_lea.vmem %s388_s2, %s308_s20 }
  0x10   : > { %v147_v3 = vld [vmem:[%s139_s19] sm:$0xff]  ;;  %v148_v4 = vld [vmem:[%s139_s19 + $0x8] sm:$0xff] }
  0x11   : > { %325 = vmatprep.mubr.msk.f32.mxu0 %vm151_vm0, %v147_v3 }
  0x12   : > { %326 = vmatmul.mubr.msk.f32.vlgmr.msra.gmra.mrb[0].mxu0 %vm151_vm0, %v148_v4 }
  0xe5   : > { %v327_v5 = vpop.f32.mrb[0].mxu0 }
  0xe6   : > { %v224_v6 = vpop.f32.mrb[1].mxu0  ;;  %v316_v8 = vpack.c.bf16 %v327_v5, %v327_v5 }
  0xe7   : > { %v315_v7 = vpack.c.bf16 %v224_v6, %v224_v6 }
  0xe8   : > { %243 = vst.msk [vmem:[%s145_s23 + $0x4] sm:$0xf] %vm241_vm1, %v316_v8 }
  0xe9   : > { %242 = vst.msk [vmem:[%s145_s23] sm:$0xf] %vm241_vm1, %v315_v7 }
  0xea PF: > { %s12_s9 = sadd.s32 1, %s346_s9  }
  0xeb   : > { %p9_p4 = scmp.ge.s32.totalorder %s12_s9, 4  }
  0xed   :  { %11 = sbr.rel (!%p9_p4) target bundleno = 1 (0x1), region = 58 }

</bundles_post_ra>
